<compile_context>
chip_gen: v7x
topology: tpu7x:2x2x1
jax: 0.10.0
libtpu: 0.0.40
codegen_flags: <defaults>
</compile_context>

<pallas_src>
import functools

import jax
import jax.numpy as jnp
from jax.experimental import pallas as pl
from jax.experimental.pallas import tpu as pltpu


def _round_up(x, m):
    return ((x + m - 1) // m) * m


def _bert_image_emb_kernel(x_ref, loc_ref, w_img_ref, w_loc_ref, b_ref,
                           gamma_ref, beta_ref, o_ref, *, eps, hidden):
    # Image-feature projection: the big MXU matmul, f32 accumulation.
    e = jnp.dot(x_ref[...], w_img_ref[...], preferred_element_type=jnp.float32)
    # Spatial-location projection (tiny K=8 matmul, negligible vs. the big one)
    # plus the pre-summed bias (b_img + b_loc).
    e = e + jnp.dot(loc_ref[...], w_loc_ref[...],
                    preferred_element_type=jnp.float32) + b_ref[...]

    # BertLayerNorm (TF style).  Single-pass statistics over the REAL hidden
    # width: padded columns of `e` are exactly zero, so dividing the raw sums
    # by `hidden` yields the exact mean / biased variance.
    inv_h = 1.0 / float(hidden)
    u = jnp.sum(e, axis=-1, keepdims=True) * inv_h
    ms = jnp.sum(e * e, axis=-1, keepdims=True) * inv_h
    var = jnp.maximum(ms - u * u, 0.0)
    inv = jax.lax.rsqrt(var + eps)            # EUP slot, not a VPU divide
    y = gamma_ref[...] * ((e - u) * inv) + beta_ref[...]

    # Dropout: identity at inference time.
    # TODO(synk): training-mode dropout would use pltpu.prng_seed / prng_random_bits.
    o_ref[...] = y.astype(o_ref.dtype)


def bert_image_embeddings(input_ids, input_loc, params, *,
                          eps=1e-12, row_tile=256, compute_dtype=None):
    """input_ids: (B, S, feature_size), input_loc: (B, S, 5)."""
    B, S, F = input_ids.shape
    _, _, L = input_loc.shape
    H = params["w_img"].shape[0]              # PyTorch Linear weight is (out, in)

    N = B * S
    out_dtype = input_ids.dtype

    # ---- lane / sublane friendly padding ---------------------------------
    L_pad = _round_up(L, 8)                   # sublane-align tiny contraction dim
    H_pad = _round_up(H, 128)                 # lane-dense output & weights

    x = input_ids.reshape(N, F)
    loc = jnp.pad(input_loc.reshape(N, L), ((0, 0), (0, L_pad - L)))

    w_img_t = jnp.pad(params["w_img"].T, ((0, 0), (0, H_pad - H)))            # (F, H_pad)
    w_loc_t = jnp.pad(params["w_loc"].T, ((0, L_pad - L), (0, H_pad - H)))    # (L_pad, H_pad)
    bias = jnp.pad((params["b_img"] + params["b_loc"]).astype(jnp.float32),
                   (0, H_pad - H)).reshape(1, H_pad)
    gamma = jnp.pad(params["ln_weight"].astype(jnp.float32),
                    (0, H_pad - H)).reshape(1, H_pad)
    beta = jnp.pad(params["ln_bias"].astype(jnp.float32),
                   (0, H_pad - H)).reshape(1, H_pad)

    if compute_dtype is not None:             # e.g. bf16 on v5e
        x = x.astype(compute_dtype)
        loc = loc.astype(compute_dtype)
        w_img_t = w_img_t.astype(compute_dtype)
        w_loc_t = w_loc_t.astype(compute_dtype)

    # ---- row tiling with ragged-tail padding -----------------------------
    row_tile = max(8, _round_up(row_tile, 8))
    row_tile_eff = min(row_tile, _round_up(N, 8))    # tiny problems -> 1 grid step
    N_pad = _round_up(N, row_tile_eff)
    if N_pad > N:
        x = jnp.pad(x, ((0, N_pad - N), (0, 0)))
        loc = jnp.pad(loc, ((0, N_pad - N), (0, 0)))
    grid = (N_pad // row_tile_eff,)

    # ---- VMEM budget + cost estimate -------------------------------------
    in_item = jnp.dtype(x.dtype).itemsize
    out_item = jnp.dtype(out_dtype).itemsize
    vmem_bytes = (2 * row_tile_eff * (F + L_pad) * in_item      # input tiles (dbl-buffered)
                  + 2 * (F + L_pad) * H_pad * in_item           # weights (dbl-buffered)
                  + 2 * 3 * H_pad * 4                           # bias / gamma / beta
                  + 2 * row_tile_eff * H_pad * out_item         # output tiles
                  + 4 * row_tile_eff * H_pad * 4)               # f32 intermediates headroom
    vmem_limit = int(min(max(vmem_bytes + (2 << 20), 16 << 20), 64 << 20))

    cost = pl.CostEstimate(
        flops=2 * N_pad * (F + L_pad) * H_pad,
        transcendentals=N_pad,
        bytes_accessed=(x.size * in_item
                        + loc.size * in_item
                        + (w_img_t.size + w_loc_t.size) * in_item
                        + 3 * H_pad * 4
                        + N_pad * H_pad * out_item),
    )

    kernel = functools.partial(_bert_image_emb_kernel, eps=eps, hidden=H)

    out = pl.pallas_call(
        kernel,
        out_shape=jax.ShapeDtypeStruct((N_pad, H_pad), out_dtype),
        grid_spec=pl.GridSpec(
            grid=grid,
            in_specs=[
                pl.BlockSpec((row_tile_eff, F), lambda i: (i, 0)),      # image feature rows
                pl.BlockSpec((row_tile_eff, L_pad), lambda i: (i, 0)),  # location rows
                pl.BlockSpec((F, H_pad), lambda i: (0, 0)),             # image weight (resident)
                pl.BlockSpec((L_pad, H_pad), lambda i: (0, 0)),         # loc weight (resident)
                pl.BlockSpec((1, H_pad), lambda i: (0, 0)),             # fused bias
                pl.BlockSpec((1, H_pad), lambda i: (0, 0)),             # LN gamma
                pl.BlockSpec((1, H_pad), lambda i: (0, 0)),             # LN beta
            ],
            out_specs=pl.BlockSpec((row_tile_eff, H_pad), lambda i: (i, 0)),
        ),
        compiler_params=pltpu.CompilerParams(
            dimension_semantics=("parallel",),
            vmem_limit_bytes=vmem_limit,
        ),
        cost_estimate=cost,
    )(x, loc, w_img_t, w_loc_t, bias, gamma, beta)

    return out[:N, :H].reshape(B, S, H)


def _reference(input_ids, input_loc, params, eps=1e-12):
    img = input_ids @ params["w_img"].T + params["b_img"]
    loc = input_loc @ params["w_loc"].T + params["b_loc"]
    e = img + loc
    u = e.mean(-1, keepdims=True)
    s = ((e - u) ** 2).mean(-1, keepdims=True)
    x = (e - u) / jnp.sqrt(s + eps)
    return params["ln_weight"] * x + params["ln_bias"]


if __name__ == "__main__":
    # Small config: feature_size=64, hidden_size=32, batch=2, seq(regions)=8.
    B, S, FEATURE, HIDDEN, LOC = 2, 8, 64, 32, 5

    key = jax.random.PRNGKey(0)
    k1, k2, k3, k4, k5, k6 = jax.random.split(key, 6)

    # Deterministic parameter init (PyTorch shapes: Linear weight is (out, in)).
    params = {
        "w_img": 0.05 * jax.random.normal(k1, (HIDDEN, FEATURE), jnp.float32),
        "b_img": 0.01 * jax.random.normal(k2, (HIDDEN,), jnp.float32),
        "w_loc": 0.05 * jax.random.normal(k3, (HIDDEN, LOC), jnp.float32),
        "b_loc": 0.01 * jax.random.normal(k4, (HIDDEN,), jnp.float32),
        "ln_weight": jnp.ones((HIDDEN,), jnp.float32),
        "ln_bias": jnp.zeros((HIDDEN,), jnp.float32),
    }

    input_ids = jax.random.normal(k5, (B, S, FEATURE), jnp.float32)   # image features
    input_loc = jax.random.uniform(k6, (B, S, LOC), jnp.float32)      # spatial locations

    out = bert_image_embeddings(input_ids, input_loc, params)
    out = jax.block_until_ready(out)

    ref = _reference(input_ids, input_loc, params)
    assert out.shape == (B, S, HIDDEN)
    assert jnp.allclose(out, ref, atol=1e-4, rtol=1e-4), "mismatch vs reference"

    print("KERNEL_OK")
</pallas_src>

<mosaic_0001>
module attributes {stable_mosaic.version = 11 : i64} {
  func.func @_bert_image_emb_kernel(%arg0: i32, %arg1: memref<16x64xf32, #tpu.memory_space<vmem>>, %arg2: memref<16x8xf32, #tpu.memory_space<vmem>>, %arg3: memref<64x128xf32, #tpu.memory_space<vmem>>, %arg4: memref<8x128xf32, #tpu.memory_space<vmem>>, %arg5: memref<1x128xf32, #tpu.memory_space<vmem>>, %arg6: memref<1x128xf32, #tpu.memory_space<vmem>>, %arg7: memref<1x128xf32, #tpu.memory_space<vmem>>, %arg8: memref<16x128xf32, #tpu.memory_space<vmem>>) attributes {dimension_semantics = [#tpu.dimension_semantics<parallel>], iteration_bounds = array<i64: 1>, scalar_prefetch = 0 : i64, scratch_operands = 0 : i64, tpu.core_type = #tpu.core_type<tc>, window_params = [{transform_indices = @transform_0, window_bounds = array<i64: 16, 64>}, {transform_indices = @transform_1, window_bounds = array<i64: 16, 8>}, {pipeline_mode = #tpu.pipeline_mode<synchronous>, transform_indices = @transform_2, window_bounds = array<i64: 64, 128>}, {pipeline_mode = #tpu.pipeline_mode<synchronous>, transform_indices = @transform_3, window_bounds = array<i64: 8, 128>}, {pipeline_mode = #tpu.pipeline_mode<synchronous>, transform_indices = @transform_4, window_bounds = array<i64: 1, 128>}, {pipeline_mode = #tpu.pipeline_mode<synchronous>, transform_indices = @transform_5, window_bounds = array<i64: 1, 128>}, {pipeline_mode = #tpu.pipeline_mode<synchronous>, transform_indices = @transform_6, window_bounds = array<i64: 1, 128>}, {transform_indices = @transform_7, window_bounds = array<i64: 16, 128>}]} {
    %c0 = arith.constant 0 : index
    %c0_0 = arith.constant 0 : index
    %0 = vector.load %arg1[%c0, %c0_0] : memref<16x64xf32, #tpu.memory_space<vmem>>, vector<16x64xf32>
    %c0_1 = arith.constant 0 : index
    %c0_2 = arith.constant 0 : index
    %1 = vector.load %arg3[%c0_1, %c0_2] : memref<64x128xf32, #tpu.memory_space<vmem>>, vector<64x128xf32>
    %cst = arith.constant dense<0.000000e+00> : vector<16x128xf32>
    %2 = tpu.matmul %0, %1, %cst {dimension_numbers = #tpu.dot_dimension_numbers<[1], [0], [0], [1], [0, 0, 1, 1], [], []>} : vector<16x64xf32>, vector<64x128xf32>, vector<16x128xf32> -> vector<16x128xf32>
    %c0_3 = arith.constant 0 : index
    %c0_4 = arith.constant 0 : index
    %3 = vector.load %arg2[%c0_3, %c0_4] : memref<16x8xf32, #tpu.memory_space<vmem>>, vector<16x8xf32>
    %c0_5 = arith.constant 0 : index
    %c0_6 = arith.constant 0 : index
    %4 = vector.load %arg4[%c0_5, %c0_6] : memref<8x128xf32, #tpu.memory_space<vmem>>, vector<8x128xf32>
    %cst_7 = arith.constant dense<0.000000e+00> : vector<16x128xf32>
    %5 = tpu.matmul %3, %4, %cst_7 {dimension_numbers = #tpu.dot_dimension_numbers<[1], [0], [0], [1], [0, 0, 1, 1], [], []>} : vector<16x8xf32>, vector<8x128xf32>, vector<16x128xf32> -> vector<16x128xf32>
    %6 = arith.addf %2, %5 : vector<16x128xf32>
    %c0_8 = arith.constant 0 : index
    %c0_9 = arith.constant 0 : index
    %7 = vector.load %arg5[%c0_8, %c0_9] : memref<1x128xf32, #tpu.memory_space<vmem>>, vector<1x128xf32>
    %8 = vector.broadcast %7 : vector<1x128xf32> to vector<16x128xf32>
    %9 = arith.addf %6, %8 : vector<16x128xf32>
    %cst_10 = arith.constant dense<0.000000e+00> : vector<16xf32>
    %10 = vector.multi_reduction <add>, %9, %cst_10 [1] : vector<16x128xf32> to vector<16xf32>
    %11 = vector.shape_cast %10 : vector<16xf32> to vector<16x1xf32>
    %cst_11 = arith.constant 3.125000e-02 : f32
    %12 = vector.broadcast %cst_11 : f32 to vector<16x1xf32>
    %13 = arith.mulf %11, %12 : vector<16x1xf32>
    %14 = arith.mulf %9, %9 : vector<16x128xf32>
    %cst_12 = arith.constant dense<0.000000e+00> : vector<16xf32>
    %15 = vector.multi_reduction <add>, %14, %cst_12 [1] : vector<16x128xf32> to vector<16xf32>
    %16 = vector.shape_cast %15 : vector<16xf32> to vector<16x1xf32>
    %cst_13 = arith.constant 3.125000e-02 : f32
    %17 = vector.broadcast %cst_13 : f32 to vector<16x1xf32>
    %18 = arith.mulf %16, %17 : vector<16x1xf32>
    %19 = arith.mulf %13, %13 : vector<16x1xf32>
    %20 = arith.subf %18, %19 : vector<16x1xf32>
    %cst_14 = arith.constant 0.000000e+00 : f32
    %21 = vector.broadcast %cst_14 : f32 to vector<16x1xf32>
    %22 = arith.maximumf %20, %21 : vector<16x1xf32>
    %cst_15 = arith.constant 9.99999996E-13 : f32
    %23 = vector.broadcast %cst_15 : f32 to vector<16x1xf32>
    %24 = arith.addf %22, %23 : vector<16x1xf32>
    %25 = math.rsqrt %24 : vector<16x1xf32>
    %c0_16 = arith.constant 0 : index
    %c0_17 = arith.constant 0 : index
    %26 = vector.load %arg6[%c0_16, %c0_17] : memref<1x128xf32, #tpu.memory_space<vmem>>, vector<1x128xf32>
    %27 = vector.broadcast %13 : vector<16x1xf32> to vector<16x128xf32>
    %28 = arith.subf %9, %27 : vector<16x128xf32>
    %29 = vector.broadcast %25 : vector<16x1xf32> to vector<16x128xf32>
    %30 = arith.mulf %28, %29 : vector<16x128xf32>
    %31 = vector.broadcast %26 : vector<1x128xf32> to vector<16x128xf32>
    %32 = arith.mulf %31, %30 : vector<16x128xf32>
    %c0_18 = arith.constant 0 : index
    %c0_19 = arith.constant 0 : index
    %33 = vector.load %arg7[%c0_18, %c0_19] : memref<1x128xf32, #tpu.memory_space<vmem>>, vector<1x128xf32>
    %34 = vector.broadcast %33 : vector<1x128xf32> to vector<16x128xf32>
    %35 = arith.addf %32, %34 : vector<16x128xf32>
    %c0_20 = arith.constant 0 : index
    %c0_21 = arith.constant 0 : index
    %36 = vector.load %arg8[%c0_20, %c0_21] : memref<16x128xf32, #tpu.memory_space<vmem>>, vector<16x128xf32>
    tpu.vector_store %arg8[%c0_20, %c0_21], %35 {strides = array<i32>} : memref<16x128xf32, #tpu.memory_space<vmem>>, vector<16x128xf32>,
    return
  }
  func.func @transform_0(%arg0: i32) -> (i32, i32) {
    %c0_i32 = arith.constant 0 : i32
    %c0_i32_0 = arith.constant 0 : i32
    return %arg0, %c0_i32 : i32, i32
  }
  func.func @transform_1(%arg0: i32) -> (i32, i32) {
    %c0_i32 = arith.constant 0 : i32
    %c0_i32_0 = arith.constant 0 : i32
    return %arg0, %c0_i32 : i32, i32
  }
  func.func @transform_2(%arg0: i32) -> (i32, i32) {
    %c0_i32 = arith.constant 0 : i32
    %c0_i32_0 = arith.constant 0 : i32
    %c0_i32_1 = arith.constant 0 : i32
    return %c0_i32, %c0_i32_0 : i32, i32
  }
  func.func @transform_3(%arg0: i32) -> (i32, i32) {
    %c0_i32 = arith.constant 0 : i32
    %c0_i32_0 = arith.constant 0 : i32
    %c0_i32_1 = arith.constant 0 : i32
    return %c0_i32, %c0_i32_0 : i32, i32
  }
  func.func @transform_4(%arg0: i32) -> (i32, i32) {
    %c0_i32 = arith.constant 0 : i32
    %c0_i32_0 = arith.constant 0 : i32
    %c0_i32_1 = arith.constant 0 : i32
    return %c0_i32, %c0_i32_0 : i32, i32
  }
  func.func @transform_5(%arg0: i32) -> (i32, i32) {
    %c0_i32 = arith.constant 0 : i32
    %c0_i32_0 = arith.constant 0 : i32
    %c0_i32_1 = arith.constant 0 : i32
    return %c0_i32, %c0_i32_0 : i32, i32
  }
  func.func @transform_6(%arg0: i32) -> (i32, i32) {
    %c0_i32 = arith.constant 0 : i32
    %c0_i32_0 = arith.constant 0 : i32
    %c0_i32_1 = arith.constant 0 : i32
    return %c0_i32, %c0_i32_0 : i32, i32
  }
  func.func @transform_7(%arg0: i32) -> (i32, i32) {
    %c0_i32 = arith.constant 0 : i32
    %c0_i32_0 = arith.constant 0 : i32
    return %arg0, %c0_i32 : i32, i32
  }
}

</mosaic_0001>

<bundles_post_ra>
// kernel: tpu_custom_call.1
= control target key start
LH: loop header
LB: loop body
LE: loop exit
PB: predicated region body
PF: predicated region fallthrough
CT: control target
= control target key end

     0   :  { %12 = vsyncpa [#allocation3], 0  ;;  %s510_s0 = inlined_call_operand.vmem [shape: f32[16,64], index: 0, kind: input, shape index: {}]   ;;  %s511_s1 = inlined_call_operand.vmem [shape: f32[16,8], index: 1, kind: input, shape index: {}]   ;;  %s512_s2 = inlined_call_operand.hbm [shape: f32[64,128], index: 2, kind: input, shape index: {}]   ;;  %s513_s3 = inlined_call_operand.vmem [shape: f32[8,128], index: 3, kind: input, shape index: {}]   ;;  %s514_s4 = inlined_call_operand.vmem [shape: f32[1,128], index: 4, kind: input, shape index: {}]   ;;  %s515_s5 = inlined_call_operand.vmem [shape: f32[1,128], index: 5, kind: input, shape index: {}]   ;;  %s516_s6 = inlined_call_operand.vmem [shape: f32[1,128], index: 6, kind: input, shape index: {}]   ;;  %s517_s7 = inlined_call_operand.hbm [shape: f32[16,128], index: 7, kind: output, shape index: {}]  }
   0x1   :  { %13 = vsyncpa [#allocation4], 0  ;;  %s410_s24 = smov [#allocation2]   ;;  %s362_s28 = scalar_lea.hbm %s512_s2, 1024 }
   0x2   :  { %s23_s25 = sshll.u32 %s410_s24, 4  ;;  %p363_p0 = scmp.ne.s32.totalorder %s512_s2, %s362_s28  ;;  %s24_s25 = int_to_ptr.vmem [resolvable:$true] %s23_s25 }
   0x3   :  { %p366_p1 = scmp.lt.u32.totalorder %s362_s28, %s512_s2 }
   0x5   :  { %p368_p2 = pnand %p366_p1, %p363_p0 }
   0x7   :  { %371 = shalt.err (!%p368_p2)
}
   0x8   :  { %s372_s10 = scalar_lea.vmem %s24_s25, 1024  ;;  %p377_p4 = scmp.lt.s32.totalorder %s24_s25, %s24_s25 }
   0x9   :  { %p373_p3 = scmp.ne.s32.totalorder %s24_s25, %s372_s10  ;;  %p378_p5 = scmp.lt.s32.totalorder %s372_s10, %s372_s10 }
   0xb   :  { %p379_p6 = por %p378_p5, %p377_p4 }
   0xd   :  { %p380_p7 = pnand %p379_p6, %p373_p3 }
   0xf   :  { %383 = shalt.err (!%p380_p7)
}
  0x10   :  { %s411_s11 = smov 128   ;;  %s412_s12 = smov 8  }
  0x11   :  { %29 = dma.hbm_to_vmem [thread:$0]  %s512_s2, 1024, %s24_s25, [#allocation3], %s411_s11, %s411_s11, %s412_s12  }
  0x12   :  { %406 = dma.done.wait [#allocation3], 1024  }
  0x13   :  { %407 = vsyncadd [#allocation3], 4294966272  ;;  %v43_v0 = vld [vmem:[#allocation2] sm:$0xff]  ;;  %v44_v1 = vld [vmem:[#allocation2 + $0x8] sm:$0xff]  ;;  %vm54_vm0 = vcmask 64512   ;;  %vm136_vm1 = vcmask 523264  }
  0x14   :  { %v45_v2 = vld [vmem:[#allocation2 + $0x10] sm:$0xff]  ;;  %v336_v3 = vpack.c.bf16 %v44_v1, %v43_v0  ;;  %v46_v4 = vld [vmem:[#allocation2 + $0x18] sm:$0xff]  ;;  %v47_v6 = vld [vmem:[#allocation2 + $0x20] sm:$0xff]  ;;  %s413_s26 = smov [#allocation5]  }
  0x15   :  { %v340_v5 = vpack.c.bf16 %v46_v4, %v45_v2  ;;  %v48_v7 = vld [vmem:[#allocation2 + $0x28] sm:$0xff]  ;;  %v53_v8 = vld [vmem:[%s513_s3] sm:$0xff]  ;;  %v49_v13 = vld [vmem:[#allocation2 + $0x30] sm:$0xff]  ;;  %s280_s27 = sshll.u32 %s413_s26, 4  ;;  %s281_s27 = int_to_ptr.vmem [resolvable:$true] %s280_s27 }
  0x16   :  { %337 = vmatprep.subr.bf16.mxu0 %v336_v3  ;;  %312 = vmatprep.subr.mxu1 %v53_v8  ;;  %v51_v9 = vld [vmem:[%s511_s1] sm:$0xff]  ;;  %v52_v10 = vld [vmem:[%s511_s1 + $0x8] sm:$0xff]  ;;  %v344_v12 = vpack.c.bf16 %v48_v7, %v47_v6  ;;  %v50_v14 = vld [vmem:[#allocation2 + $0x38] sm:$0xff]  ;;  %s384_s28 = scalar_lea.vmem %s281_s27, 256  ;;  %p389_p9 = scmp.lt.s32.totalorder %s281_s27, %s281_s27 }
  0x17   :  { %v41_v11 = vld [vmem:[%s510_s0] sm:$0xff]  ;;  %339 = vmatpush3.bf16.msra.mxu0 %v336_v3  ;;  %313 = vmatpush3.msra.mxu1 %v53_v8  ;;  %v348_v15 = vpack.c.bf16 %v50_v14, %v49_v13  ;;  %v42_v16 = vld [vmem:[%s510_s0 + $0x8] sm:$0xff]  ;;  %p385_p8 = scmp.ne.s32.totalorder %s281_s27, %s384_s28  ;;  %p390_p10 = scmp.lt.s32.totalorder %s384_s28, %s384_s28 }
  0x18   :  { %341 = vmatprep.subr.bf16.mxu0 %v340_v5  ;;  %314 = vmatprep.mubr.msk.f32.mxu1 %vm54_vm0, %v51_v9  ;;  %v296_v21 = vld [vmem:[%s514_s4] ss:$0 sm:$0xff] }
  0x19   :  { %315 = vmatmul.mubr.msk.f32.vlgmr.msra.gmra.mrb[0].mxu1 %vm54_vm0, %v52_v10  ;;  %333 = vmatprep.mubr.msk.f32.mxu0 %vm136_vm1, %v41_v11  ;;  %v297_v46 = vld [vmem:[%s515_s5] ss:$0 sm:$0xff]  ;;  %p391_p11 = por %p390_p10, %p389_p9 }
  0x1a   :  { %v298_v48 = vld [vmem:[%s516_s6] ss:$0 sm:$0xff] }
  0x1b   :  { %343 = vmatpush3.bf16.msra.mxu0 %v340_v5  ;;  %p392_p12 = pnand %p391_p11, %p385_p8 }
  0x1c   :  { %345 = vmatprep.subr.bf16.mxu0 %v344_v12 }
  0x1f   :  { %347 = vmatpush3.bf16.msra.mxu0 %v344_v12 }
  0x20   :  { %349 = vmatprep.subr.bf16.mxu0 %v348_v15 }
  0x23   :  { %351 = vmatpush3.bf16.msra.mxu0 %v348_v15 }
  0x26   :  { %334 = vmatmul.mubr.msk.f32.vlgmr.msra.gmra.mrb[0].mxu0 %vm136_vm1, %v42_v16 }
  0xec   :  { %v316_v17 = vpop.f32.mrb[0].mxu1 }
  0xed   :  { %v127_v18 = vpop.f32.mrb[1].mxu1 }
  0xf9   :  { %v335_v19 = vpop.f32.mrb[0].mxu0 }
  0xfa   :  { %v215_v20 = vadd.f32 %v335_v19, %v316_v17  ;;  %v209_v22 = vpop.f32.mrb[1].mxu0 }
  0xfb   :  { %v210_v23 = vadd.f32 %v209_v22, %v127_v18 }
  0xfc   :  { %v226_v25 = vadd.f32 %v296_v21, %v215_v20 }
  0xfd   :  { %v225_v24 = vadd.f32 %v296_v21, %v210_v23 }
  0xfe   :  { %v234_v27 = vmul.f32 %v226_v25, %v226_v25 }
  0xff   :  { %227 = vadd.xlane.f32.xlu0 %v225_v24  ;;  %v233_v26 = vmul.f32 %v225_v24, %v225_v24 }
 0x101   :  { %235 = vadd.xlane.f32.xlu1 %v233_v26 }
 0x103   :  { %229 = vadd.xlane.f32.xlu0 %v226_v25 }
 0x105   :  { %237 = vadd.xlane.f32.xlu1 %v234_v27 }
 0x18c   :  { %v228_v28 = vpop.xlane.xlu0 %227 }
 0x18d   :  { %v231_v29 = vmul.f32 0.03125, %v228_v28 }
 0x18e   :  { %v236_v30 = vpop.xlane.xlu1 %235 }
 0x18f   :  { %v241_v31 = vmul.f32 %v231_v29, %v231_v29  ;;  %v239_v32 = vmul.f32 0.03125, %v236_v30  ;;  %v252_v44 = vsub.f32 %v225_v24, %v231_v29 }
 0x190   :  { %v230_v33 = vpop.xlane.xlu0 %229 }
 0x191   :  { %v243_v34 = vsub.f32 %v239_v32, %v241_v31  ;;  %v232_v35 = vmul.f32 0.03125, %v230_v33 }
 0x192   :  { %v238_v36 = vpop.xlane.xlu1 %237 }
 0x193   :  { %v245_v37 = vmax.f32 %v243_v34, 0.0  ;;  %v242_v38 = vmul.f32 %v232_v35, %v232_v35  ;;  %v240_v39 = vmul.f32 0.03125, %v238_v36  ;;  %v253_v49 = vsub.f32 %v226_v25, %v232_v35 }
 0x195   :  { %v247_v40 = vadd.f32 1e-12, %v245_v37  ;;  %v244_v41 = vsub.f32 %v240_v39, %v242_v38 }
 0x197   :  { %358 = vrsqrt.f32 %v247_v40  ;;  %v246_v42 = vmax.f32 %v244_v41, 0.0 }
 0x199   :  { %v248_v43 = vadd.f32 1e-12, %v246_v42 }
 0x19b   :  { %360 = vrsqrt.f32 %v248_v43 }
 0x1a1   :  { %v359_v45 = vpop.eup %358 }
 0x1a2   :  { %v254_v47 = vmul.f32 %v359_v45, %v252_v44 }
 0x1a4   :  { %v262_v50 = vmul.f32 %v297_v46, %v254_v47 }
 0x1a5   :  { %v361_v51 = vpop.eup %360 }
 0x1a6   :  { %v255_v52 = vmul.f32 %v361_v51, %v253_v49  ;;  %v271_v53 = vadd.f32 %v298_v48, %v262_v50 }
 0x1a8   :  { %v263_v54 = vmul.f32 %v297_v46, %v255_v52  ;;  %273 = vst [vmem:[#allocation5] sm:$0xff] %v271_v53 }
 0x1aa   :  { %v272_v55 = vadd.f32 %v298_v48, %v263_v54 }
 0x1ac   :  { %274 = vst [vmem:[#allocation5 + $0x8] sm:$0xff] %v272_v55 }
 0x1ad   :  { %395 = shalt.err (!%p392_p12)
}
 0x1ae   :  { %s396_s29 = scalar_lea.hbm %s517_s7, 256 }
 0x1af   :  { %p397_p13 = scmp.ne.s32.totalorder %s517_s7, %s396_s29  ;;  %p400_p0 = scmp.lt.u32.totalorder %s396_s29, %s517_s7 }
 0x1b1   :  { %p402_p1 = pnand %p400_p0, %p397_p13 }
 0x1b3   :  { %405 = shalt.err (!%p402_p1)
}
 0x1b4   :  { %286 = dma.vmem_to_hbm [thread:$0]  %s281_s27, 256, %s517_s7, [#allocation4], %s411_s11, %s411_s11, %s412_s12  }
 0x1b5   :  { %408 = dma.done.wait [#allocation4], 256  }
 0x1b6   :  { %409 = vsyncadd [#allocation4], 4294967040 }
 0x1b7   :  { %290 = vsyncpa [#allocation3], 1 }
 0x1b8   :  { %291 = vsyncpa [#allocation4], 1 }

</bundles_post_ra>
